<compile_context>
chip_gen: v7x
topology: tpu7x:2x2x1
jax: 0.10.0
libtpu: 0.0.40
codegen_flags: <defaults>
</compile_context>

<pallas_src>
import functools

import jax
import jax.numpy as jnp
from jax.experimental import pallas as pl
from jax.experimental.pallas import tpu as pltpu


def _round_up(a, b):
    return ((a + b - 1) // b) * b


def _cdiv(a, b):
    return (a + b - 1) // b


@functools.lru_cache(maxsize=1)
def _vmem_capacity_bytes():
    """Physical VMEM per core (generation-aware); conservative v7x fallback."""
    try:
        cap = int(getattr(pltpu.get_tpu_info(), "vmem_capacity_bytes"))
        if cap > 0:
            return cap
    except Exception:
        pass
    return 64 * 1024 * 1024


def _lane_pack(K, E):
    """Patch rows folded into the lane dim so the output last dim is 128-dense.
    Never more than 128//E; disabled if the block-diagonal weight expansion
    (pack**2 x resident bytes, pack x MXU contraction) would get too big."""
    if E >= 128 or 128 % E != 0:
        return 1
    pack = 128 // E
    if (pack * K) * (pack * E) * 2 > 16 * 1024 * 1024:
        return 1
    return pack


def _choose_tile_rows(rows, Kp, Ep):
    """Largest packed-row tile whose double-buffered working set fits ~0.5x the
    generation's physical VMEM, quantised to the bf16 sublane tile (16 rows),
    capped so the 1-D grid has >=4 steps when rows permit (v7x megacore +
    prefetch/writeback overlap)."""
    quantum = 16                                     # bf16 native (16,128) vreg tile
    budget = _vmem_capacity_bytes() // 2
    # per packed row: 2x-buffered bf16 in + bf16 out, f32 dot intermediate,
    # and (worst case) a 2x-buffered f32 fused pos/bias row.
    per_row = 2 * (Kp * 2 + Ep * 2) + Ep * 4 + 2 * Ep * 4
    resident = Kp * Ep * 2
    avail = max(budget - resident, quantum * per_row)
    tile = max((avail // per_row) // quantum * quantum, quantum)
    tile = min(tile, 4096)
    tile = min(tile, _round_up(max(_cdiv(rows, 4), 1), quantum))
    if tile >= rows:
        return rows                                  # single full block
    return tile


def _align_tile_for_pos(tile, pos_rows, rows):
    """Adjust the packed-row tile so every tile starts at a multiple of the
    per-image pos period (pos_rows). Returns None if no legal aligned tile."""
    def ok(t):
        return t == rows or (t % 8 == 0 and t <= rows)

    if tile % pos_rows == 0 or pos_rows % tile == 0:
        return tile
    if tile > pos_rows:
        cand = (tile // pos_rows) * pos_rows
        if cand > 0 and ok(cand):
            return cand
    for d in range(min(tile, pos_rows), 0, -1):      # divisors of pos_rows
        if pos_rows % d == 0 and ok(d):
            return d
    return None


def fused_patch_embed_kernel(p_ref, w_ref, c_ref, o_ref):
    # p_ref: (TILE, Kp) bf16   lane-packed flattened patches
    # w_ref: (Kp, Ep)   bf16   (block-diagonal) fused conv+encoder weight, resident
    # c_ref: (Tc, Ep)   f32    fused additive term (bias [+ lane-packed pos]);
    #                          Tc is TILE or 1 (broadcasts)
    # o_ref: (TILE, Ep) bf16   lane-dense output, cast only at the store
    z = jnp.dot(p_ref[...], w_ref[...], preferred_element_type=jnp.float32)
    o_ref[...] = (z + c_ref[...]).astype(o_ref.dtype)


def prepare_params(params):
    """One-time parameter prep (load time, NOT per forward): fold conv + Linear
    into one pre-transposed bf16 weight, fuse biases, lane-pack small E via a
    block-diagonal expansion, keep pos/cls for the (possibly fused) epilogue."""
    conv_w = params["conv_w"].astype(jnp.float32)    # (K, C, ps, ps)
    conv_b = params["conv_b"].astype(jnp.float32)    # (K,)
    enc_w = params["enc_w"].astype(jnp.float32)      # (E, K)
    enc_b = params["enc_b"].astype(jnp.float32)      # (E,)
    pos = params["pos_embedding"].astype(jnp.float32)    # (1, N+1, E)
    cls = params["cls_token"].astype(jnp.float32)        # (1, 1, E)

    K = conv_w.shape[1] * conv_w.shape[2] * conv_w.shape[3]
    E = enc_w.shape[0]
    # This PatchEncoder variant uses out_channels == patch_dim == C*ps*ps.
    assert conv_w.shape[0] == K and enc_w.shape[1] == K

    wc_t = conv_w.reshape(K, K).T                    # (K_in, K_out), rows = (c, i, j)
    w_fused = wc_t @ enc_w.T                         # (K, E)
    b_fused = (conv_b @ enc_w.T + enc_b).reshape(1, E)

    pack = _lane_pack(K, E)
    if pack > 1:
        # Block-diagonal expansion: a plain matmul on lane-packed rows produces
        # the row-major packed output directly — no in-kernel reshape.
        w_fused = jnp.kron(jnp.eye(pack, dtype=jnp.float32), w_fused)  # (pack*K, pack*E)
        b_fused = jnp.tile(b_fused, (1, pack))                          # (1, pack*E)

    return {
        "w": w_fused.astype(jnp.bfloat16),
        "b": b_fused,                                # f32, (1, pack*E)
        "cls": cls[:, 0, :],                         # f32, (1, E)
        "pos_patch": pos[0, 1:, :],                  # f32, (N, E)  patch positions
        "pos_embedding": pos,                        # f32, (1, N+1, E) (unfused path)
    }


@functools.partial(jax.jit, static_argnums=(2,))
def patch_encoder_forward(x, prep, patch_size):
    """x: (B, C, H, W) float32, NCHW (PyTorch convention). Returns bf16."""
    B, C, H, W = x.shape
    ps = patch_size
    nh, nw = H // ps, W // ps
    N = nh * nw
    K = C * ps * ps
    E = prep["cls"].shape[-1]
    Kp, Ep = prep["w"].shape
    pack = Ep // E
    assert Kp == pack * K
    M = B * N

    # --- glue: cast to bf16 FIRST so the patch-extraction transpose moves half
    # the bytes; (c, i, j) order matches the Conv2d weight layout.
    # TODO(synk): if the caller can hand over NHWC / bf16 activations, the
    # transpose pass disappears entirely.
    p = x.astype(jnp.bfloat16)
    p = p.reshape(B, C, nh, ps, nw, ps).transpose(0, 2, 4, 1, 3, 5).reshape(M, K)

    pad = (-M) % pack                                # tiny (< pack rows), usually 0
    if pad:
        p = jnp.pad(p, ((0, pad), (0, 0)))
    rows = (M + pad) // pack
    p = p.reshape(rows, Kp)                          # pure row-major lane packing

    tile = _choose_tile_rows(rows, Kp, Ep)

    # Fuse the positional-embedding add for patch rows into the kernel when the
    # tile can be aligned with the per-image pos period; else bf16 XLA epilogue.
    fuse_pos = (pad == 0) and (N % pack == 0)
    pos_rows = N // pack if fuse_pos else 0
    if fuse_pos:
        aligned = _align_tile_for_pos(tile, pos_rows, rows)
        if aligned is None or (aligned < tile and aligned < 32):
            fuse_pos = False
        else:
            tile = aligned

    if fuse_pos:
        pos_packed = prep["pos_patch"].reshape(pos_rows, Ep) + prep["b"]   # f32
        if tile % pos_rows == 0:
            # Pre-tile one tile's worth; resident and reused by every grid step.
            c = jnp.tile(pos_packed, (tile // pos_rows, 1))
            c_spec = pl.BlockSpec((tile, Ep), lambda i: (0, 0))
        else:                                        # tile divides pos_rows
            nb = pos_rows // tile
            c = pos_packed
            c_spec = pl.BlockSpec((tile, Ep), lambda i: (i % nb, 0))
    else:
        c = prep["b"]                                # (1, Ep) f32, broadcasts in-kernel
        c_spec = pl.BlockSpec((1, Ep), lambda i: (0, 0))

    grid = (_cdiv(rows, tile),)                      # ragged last block is masked
    c_rows = c.shape[0]

    cap = _vmem_capacity_bytes()
    vmem_est = (2 * tile * Kp * 2                    # double-buffered bf16 patches
                + 2 * tile * Ep * 2                  # double-buffered bf16 output
                + tile * Ep * 4                      # f32 matmul intermediate
                + Kp * Ep * 2                        # resident fused weight
                + 2 * c_rows * Ep * 4)               # additive term (conservative 2x)
    vmem_limit = int(min(max(vmem_est + (8 << 20), 32 << 20), int(cap * 0.7)))

    out = pl.pallas_call(
        fused_patch_embed_kernel,
        out_shape=jax.ShapeDtypeStruct((rows, Ep), jnp.bfloat16),
        grid=grid,
        in_specs=[
            pl.BlockSpec((tile, Kp), lambda i: (i, 0)),   # patches, tiled over rows
            pl.BlockSpec((Kp, Ep), lambda i: (0, 0)),     # resident fused weight
            c_spec,                                       # fused bias (+ pos)
        ],
        out_specs=pl.BlockSpec((tile, Ep), lambda i: (i, 0)),
        compiler_params=pltpu.CompilerParams(
            dimension_semantics=("parallel",),
            vmem_limit_bytes=vmem_limit,
        ),
        cost_estimate=pl.CostEstimate(
            flops=2 * rows * Kp * Ep,
            transcendentals=0,
            bytes_accessed=rows * Kp * 2 + Kp * Ep * 2 + c_rows * Ep * 4
                           + rows * Ep * 2,
        ),
    )(p, prep["w"], c)

    out_flat = out.reshape(rows * pack, E)
    if pad:
        out_flat = out_flat[:M]
    z = out_flat.reshape(B, N, E)

    if fuse_pos:
        cls_row = (prep["cls"] + prep["pos_embedding"][:, 0, :]).astype(z.dtype)
        cls_row = jnp.broadcast_to(cls_row[:, None, :], (B, 1, E))
        return jnp.concatenate([cls_row, z], axis=1)          # (B, N+1, E)

    cls_row = jnp.broadcast_to(prep["cls"].astype(z.dtype)[:, None, :], (B, 1, E))
    z = jnp.concatenate([cls_row, z], axis=1)
    return z + prep["pos_embedding"].astype(z.dtype)


def reference_forward(x, params, patch_size):
    """Pure-JAX f32 reference of the PyTorch forward (for correctness check)."""
    B, C, H, W = x.shape
    ps = patch_size
    nh, nw = H // ps, W // ps
    N = nh * nw
    K = C * ps * ps
    p = x.reshape(B, C, nh, ps, nw, ps).transpose(0, 2, 4, 1, 3, 5).reshape(B, N, K)
    conv_out = p @ params["conv_w"].reshape(K, K).T + params["conv_b"]
    z = conv_out @ params["enc_w"].T + params["enc_b"]
    cls = jnp.broadcast_to(params["cls_token"], (B, 1, z.shape[-1]))
    z = jnp.concatenate([cls, z], axis=1)
    return z + params["pos_embedding"]


if __name__ == "__main__":
    # Module hyper-params (small, consistent with the forward):
    image_size, in_channels, patch_size, embed_dim = 16, 4, 4, 32
    patch_dim = in_channels * patch_size ** 2           # 64
    num_patches = image_size ** 2 // patch_size ** 2    # 16
    B = 2

    key = jax.random.PRNGKey(0)
    kx, k1, k2, k3, k4, k5, k6 = jax.random.split(key, 7)

    x = jax.random.normal(kx, (B, in_channels, image_size, image_size), jnp.float32)

    params = {
        "conv_w": 0.05 * jax.random.normal(k1, (patch_dim, in_channels, patch_size, patch_size), jnp.float32),
        "conv_b": 0.05 * jax.random.normal(k2, (patch_dim,), jnp.float32),
        "enc_w": 0.05 * jax.random.normal(k3, (embed_dim, patch_dim), jnp.float32),
        "enc_b": 0.05 * jax.random.normal(k4, (embed_dim,), jnp.float32),
        "cls_token": jax.random.normal(k5, (1, 1, embed_dim), jnp.float32),
        "pos_embedding": jax.random.normal(k6, (1, num_patches + 1, embed_dim), jnp.float32),
    }

    prep = prepare_params(params)                        # one-time fusion / transposes
    out = patch_encoder_forward(x, prep, patch_size)
    out = jax.block_until_ready(out)

    ref = reference_forward(x, params, patch_size)
    assert out.shape == (B, num_patches + 1, embed_dim), out.shape
    # bf16 activations/output on the MXU + fused-weight re-association -> loose tol.
    assert jnp.allclose(out.astype(jnp.float32), ref, atol=1e-2, rtol=1e-2), \
        float(jnp.abs(out.astype(jnp.float32) - ref).max())

    print("KERNEL_OK")
</pallas_src>

<mosaic_0001>
module attributes {stable_mosaic.version = 11 : i64} {
  func.func @fused_patch_embed_kernel(%arg0: i32, %arg1: memref<8x256xbf16, #tpu.memory_space<vmem>>, %arg2: memref<256x128xbf16, #tpu.memory_space<vmem>>, %arg3: memref<8x128xf32, #tpu.memory_space<vmem>>, %arg4: memref<8x128xbf16, #tpu.memory_space<vmem>>) attributes {dimension_semantics = [#tpu.dimension_semantics<parallel>], iteration_bounds = array<i64: 1>, scalar_prefetch = 0 : i64, scratch_operands = 0 : i64, tpu.core_type = #tpu.core_type<tc>, window_params = [{transform_indices = @transform_0, window_bounds = array<i64: 8, 256>}, {pipeline_mode = #tpu.pipeline_mode<synchronous>, transform_indices = @transform_1, window_bounds = array<i64: 256, 128>}, {pipeline_mode = #tpu.pipeline_mode<synchronous>, transform_indices = @transform_2, window_bounds = array<i64: 8, 128>}, {transform_indices = @transform_3, window_bounds = array<i64: 8, 128>}]} {
    %c0 = arith.constant 0 : index
    %c0_0 = arith.constant 0 : index
    %0 = vector.load %arg1[%c0, %c0_0] : memref<8x256xbf16, #tpu.memory_space<vmem>>, vector<8x256xbf16>
    %c0_1 = arith.constant 0 : index
    %c0_2 = arith.constant 0 : index
    %1 = vector.load %arg2[%c0_1, %c0_2] : memref<256x128xbf16, #tpu.memory_space<vmem>>, vector<256x128xbf16>
    %cst = arith.constant dense<0.000000e+00> : vector<8x128xf32>
    %2 = tpu.matmul %0, %1, %cst {dimension_numbers = #tpu.dot_dimension_numbers<[1], [0], [0], [1], [0, 0, 1, 1], [], []>} : vector<8x256xbf16>, vector<256x128xbf16>, vector<8x128xf32> -> vector<8x128xf32>
    %c0_3 = arith.constant 0 : index
    %c0_4 = arith.constant 0 : index
    %3 = vector.load %arg3[%c0_3, %c0_4] : memref<8x128xf32, #tpu.memory_space<vmem>>, vector<8x128xf32>
    %4 = arith.addf %2, %3 : vector<8x128xf32>
    %5 = arith.truncf %4 : vector<8x128xf32> to vector<8x128xbf16>
    %c0_5 = arith.constant 0 : index
    %c0_6 = arith.constant 0 : index
    %6 = vector.load %arg4[%c0_5, %c0_6] : memref<8x128xbf16, #tpu.memory_space<vmem>>, vector<8x128xbf16>
    tpu.vector_store %arg4[%c0_5, %c0_6], %5 {strides = array<i32>} : memref<8x128xbf16, #tpu.memory_space<vmem>>, vector<8x128xbf16>,
    return
  }
  func.func @transform_0(%arg0: i32) -> (i32, i32) {
    %c0_i32 = arith.constant 0 : i32
    %c0_i32_0 = arith.constant 0 : i32
    return %arg0, %c0_i32 : i32, i32
  }
  func.func @transform_1(%arg0: i32) -> (i32, i32) {
    %c0_i32 = arith.constant 0 : i32
    %c0_i32_0 = arith.constant 0 : i32
    %c0_i32_1 = arith.constant 0 : i32
    return %c0_i32, %c0_i32_0 : i32, i32
  }
  func.func @transform_2(%arg0: i32) -> (i32, i32) {
    %c0_i32 = arith.constant 0 : i32
    %c0_i32_0 = arith.constant 0 : i32
    %c0_i32_1 = arith.constant 0 : i32
    return %c0_i32, %c0_i32_0 : i32, i32
  }
  func.func @transform_3(%arg0: i32) -> (i32, i32) {
    %c0_i32 = arith.constant 0 : i32
    %c0_i32_0 = arith.constant 0 : i32
    return %arg0, %c0_i32 : i32, i32
  }
}

</mosaic_0001>

<bundles_post_ra>
// kernel: patch_encoder_forward.1
= control target key start
LH: loop header
LB: loop body
LE: loop exit
PB: predicated region body
PF: predicated region fallthrough
CT: control target
= control target key end

     0   :  { %s333_s1 = inlined_call_operand.vmem [shape: bf16[256,128], index: 1, kind: input, shape index: {}]   ;;  %s334_s0 = inlined_call_operand.vmem [shape: bf16[8,256], index: 0, kind: input, shape index: {}]   ;;  %s335_s2 = inlined_call_operand.vmem [shape: f32[8,128], index: 2, kind: input, shape index: {}]   ;;  %s336_s3 = inlined_call_operand.vmem [shape: bf16[8,128], index: 3, kind: output, shape index: {}]  }
   0x1   :  { %v238_v0 = vld [vmem:[%s333_s1 + $0x40] sm:$0xff]   ;;  %v240_v2 = vld [vmem:[%s333_s1 + $0x48] sm:$0xff]   ;;  %v242_v4 = vld [vmem:[%s333_s1 + $0x50] sm:$0xff]  }
   0x2   :  { %v239_v1 = vld [vmem:[%s333_s1] sm:$0xff]   ;;  %216 = vmatprep.subr.bf16.mxu0 %v238_v0  ;;  %v241_v3 = vld [vmem:[%s333_s1 + $0x8] sm:$0xff]   ;;  %v243_v5 = vld [vmem:[%s333_s1 + $0x10] sm:$0xff]  }
   0x3   :  { %217 = vmatpush3.bf16.msra.mxu0 %v239_v1  ;;  %v244_v6 = vld [vmem:[%s333_s1 + $0x58] sm:$0xff]   ;;  %v246_v8 = vld [vmem:[%s333_s1 + $0x60] sm:$0xff]   ;;  %v248_v10 = vld [vmem:[%s333_s1 + $0x68] sm:$0xff]  }
   0x4   :  { %218 = vmatprep.subr.bf16.mxu0 %v240_v2  ;;  %v245_v7 = vld [vmem:[%s333_s1 + $0x18] sm:$0xff]   ;;  %v247_v9 = vld [vmem:[%s333_s1 + $0x20] sm:$0xff]   ;;  %v249_v13 = vld [vmem:[%s333_s1 + $0x28] sm:$0xff]  }
   0x5   :  { %v15_v11 = vld [vmem:[%s334_s0] sm:$0xff]  ;;  %v250_v14 = vld [vmem:[%s333_s1 + $0x70] sm:$0xff]   ;;  %v252_v16 = vld [vmem:[%s333_s1 + $0x78] sm:$0xff]  }
   0x6   :  { %v199_v12 = vcombine.high %v15_v11, %v15_v11  ;;  %v251_v15 = vld [vmem:[%s333_s1 + $0x30] sm:$0xff]   ;;  %v253_v17 = vld [vmem:[%s333_s1 + $0x38] sm:$0xff]   ;;  %v198_v18 = vcombine.low %v15_v11, %v15_v11  ;;  %v48_v20 = vld [vmem:[%s335_s2] sm:$0xff] }
   0x7   :  { %219 = vmatpush3.bf16.msra.mxu0 %v241_v3 }
   0x8   :  { %220 = vmatprep.subr.bf16.mxu0 %v242_v4  ;;  %184 = vmatprep.mubr.bf16.mxu0 %v199_v12 }
   0xb   :  { %221 = vmatpush3.bf16.msra.mxu0 %v243_v5 }
   0xc   :  { %222 = vmatprep.subr.bf16.mxu0 %v244_v6 }
   0xf   :  { %223 = vmatpush3.bf16.msra.mxu0 %v245_v7 }
  0x10   :  { %224 = vmatprep.subr.bf16.mxu0 %v246_v8 }
  0x13   :  { %225 = vmatpush3.bf16.msra.mxu0 %v247_v9 }
  0x14   :  { %226 = vmatprep.subr.bf16.mxu0 %v248_v10 }
  0x17   :  { %227 = vmatpush3.bf16.msra.mxu0 %v249_v13 }
  0x18   :  { %228 = vmatprep.subr.bf16.mxu0 %v250_v14 }
  0x1b   :  { %229 = vmatpush3.bf16.msra.mxu0 %v251_v15 }
  0x1c   :  { %230 = vmatprep.subr.bf16.mxu0 %v252_v16 }
  0x1f   :  { %231 = vmatpush3.bf16.msra.mxu0 %v253_v17 }
  0x22   :  { %185 = vmatmul.mubr.bf16.vlgmr.msra.gmra.mrb[0].mxu0 %v198_v18 }
  0xf5   :  { %v232_v19 = vpop.f32.mrb[0].mxu0 }
  0xf6   :  { %v233_v21 = vpop.f32.mrb[1].mxu0 }
  0xf7   :  { %v234_v22 = vadd.f32 %v233_v21, %v232_v19  ;;  %v235_v23 = vpop.f32.mrb[2].mxu0 }
  0xf8   :  { %v236_v24 = vpop.f32.mrb[3].mxu0 }
  0xf9   :  { %v187_v25 = vadd.f32 %v234_v22, %v48_v20 }
  0xfb   :  { %v192_v26 = vpack.c.bf16 %v187_v25, %v187_v25 }
  0xfd   :  { %193 = vst [vmem:[%s336_s3] sm:$0xf] %v192_v26 }

</bundles_post_ra>
